<compile_context>
chip_gen: v6e
topology: v6e:2x2x1
jax: 0.10.0
libtpu: 0.0.40
codegen_flags: <defaults>
</compile_context>

<pallas_src>
import numpy as np
import jax
import jax.numpy as jnp
from jax.experimental import pallas as pl
from jax.experimental.pallas import tpu as pltpu

_LANES = 128


def _cdiv(a, b):
    return -(-a // b)


def _round_up(x, m):
    return _cdiv(x, m) * m


def _acc_dtype(a_dt, b_dt):
    dt = jnp.promote_types(a_dt, b_dt)
    if jnp.issubdtype(dt, jnp.floating):
        dt = jnp.promote_types(dt, jnp.float32)   # accumulate sub-f32 floats in f32
    return dt


def _make_residual_kernel(acc_dt, has_scale):
    """Elementwise residual add on one (tile_rows, 128) slab, casts in-kernel."""
    if has_scale:
        def kernel(scale_ref, base_ref, short_ref, out_ref):
            s = scale_ref[0, 0].astype(acc_dt)
            out_ref[...] = (base_ref[...].astype(acc_dt)
                            + short_ref[...].astype(acc_dt) * s).astype(out_ref.dtype)
    else:
        def kernel(base_ref, short_ref, out_ref):
            out_ref[...] = (base_ref[...].astype(acc_dt)
                            + short_ref[...].astype(acc_dt)).astype(out_ref.dtype)
    return kernel


def _fused_residual_add(base_out, shortcut_out, *, shortcut_scale=None,
                        target_block_bytes=4 << 20, min_pallas_bytes=1 << 20):
    """Pallas-fused `base_out + [scale *] shortcut_out` with zero extra HBM passes."""
    out_dtype = jnp.result_type(base_out.dtype, shortcut_out.dtype)

    def _plain():
        s = shortcut_out if shortcut_scale is None else shortcut_out * shortcut_scale
        return (base_out + s).astype(out_dtype)

    if base_out.shape != shortcut_out.shape:
        return _plain()

    orig_shape = base_out.shape
    n = int(np.prod(orig_shape)) if orig_shape else 1
    out_itemsize = jnp.dtype(out_dtype).itemsize

    # Small tensors: kernel launch + grid overhead costs more than a fused XLA add.
    # TODO(synk): non-lane-aligned element counts would need a padding copy (an
    # extra full HBM pass); XLA's fused add is already at roofline there, so fall back.
    if n == 0 or n % _LANES != 0 or n * out_itemsize < min_pallas_bytes:
        return _plain()

    has_scale = shortcut_scale is not None
    if has_scale and not jnp.issubdtype(out_dtype, jnp.floating):
        return _plain()

    itemsizes = (base_out.dtype.itemsize, shortcut_out.dtype.itemsize, out_itemsize)
    min_item, max_item = min(itemsizes), max(itemsizes)
    sublane_align = 8 * max(1, 4 // min_item)   # 8 rows f32, 16 bf16, 32 int8/fp8

    rows = n // _LANES
    # Largest per-operand block (in rows) under the ~4 MiB/operand budget.
    cap_rows = max(sublane_align,
                   (target_block_bytes // (_LANES * max_item))
                   // sublane_align * sublane_align)
    # >= 2 grid steps whenever possible so the "parallel" axis can use both
    # TensorCores on v7x (single-step grids leave one TC idle).
    n_steps = max(2, _cdiv(rows, cap_rows))
    tile_rows = min(cap_rows, _round_up(_cdiv(rows, n_steps), sublane_align))
    grid = (_cdiv(rows, tile_rows),)   # ragged last block: reads padded, writes masked

    # Contiguous reshapes -> no HBM copy, no pad, no output slice.
    a2 = base_out.reshape(rows, _LANES)
    b2 = shortcut_out.reshape(rows, _LANES)

    tile_spec = pl.BlockSpec((tile_rows, _LANES), lambda i: (i, 0))
    in_specs = [tile_spec, tile_spec]
    args = [a2, b2]
    if has_scale:
        # Scalar scale lives in SMEM; applied on the VPU inside the kernel.
        in_specs = [pl.BlockSpec(memory_space=pltpu.MemorySpace.SMEM)] + in_specs
        args = [jnp.full((1, 1), shortcut_scale, dtype=jnp.float32)] + args

    kernel = _make_residual_kernel(_acc_dtype(base_out.dtype, shortcut_out.dtype),
                                   has_scale)

    bytes_accessed = n * (base_out.dtype.itemsize
                          + shortcut_out.dtype.itemsize
                          + out_itemsize)

    out = pl.pallas_call(
        kernel,
        out_shape=jax.ShapeDtypeStruct((rows, _LANES), out_dtype),
        grid_spec=pltpu.PrefetchScalarGridSpec(
            num_scalar_prefetch=0,
            grid=grid,
            in_specs=in_specs,
            out_specs=pl.BlockSpec((tile_rows, _LANES), lambda i: (i, 0)),
        ),
        compiler_params=pltpu.CompilerParams(
            dimension_semantics=("parallel",),   # independent tiles -> megacore on v7x
            vmem_limit_bytes=40 << 20,           # 3 operands x 2 buffers x <=4 MiB ~ 24 MiB
        ),
        cost_estimate=pl.CostEstimate(
            flops=n * (2 if has_scale else 1),
            transcendentals=0,
            bytes_accessed=bytes_accessed,
        ),
    )(*args)

    return out.reshape(orig_shape)   # contiguous reshape: no copy, no slice


def shortcut_block(x, base_fn, shortcut_fn=None, shortcut_scale=None,
                   min_pallas_bytes=1 << 20):
    """JAX/Pallas equivalent of ShortcutBlock(base, shortcut).forward(x).

    # TODO(synk): `base` / `shortcut` are arbitrary nn.Module sub-modules in the
    # spec; they run here as user-provided JAX callables outside the kernel.
    # Only the block's own op (the residual add, optionally with a fused scalar
    # scaling shortcut) is implemented as a Pallas kernel.
    """
    base_out = base_fn(x)
    if shortcut_scale is not None:
        # Cheap scaling shortcut fused into the add kernel: raw x streams once,
        # scaled on the VPU; `scale * x` is never materialised in HBM.
        return _fused_residual_add(base_out, x, shortcut_scale=float(shortcut_scale),
                                   min_pallas_bytes=min_pallas_bytes)
    short_out = shortcut_fn(x) if shortcut_fn is not None else x
    return _fused_residual_add(base_out, short_out,
                               min_pallas_bytes=min_pallas_bytes)


def shortcut_block_ref(x, base_fn, shortcut_fn=None):
    """Pure-JAX reference matching the PyTorch forward exactly."""
    base_out = base_fn(x)
    short_out = shortcut_fn(x) if shortcut_fn is not None else x
    return base_out + short_out


if __name__ == "__main__":
    key = jax.random.PRNGKey(0)
    kx, kw = jax.random.split(key)

    # NCHW input, small shapes: batch=2, channels=4, spatial=16x16.
    B, C, H, W = 2, 4, 16, 16
    x = jax.random.normal(kx, (B, C, H, W), dtype=jnp.float32)

    # Example `base` sub-module: 1x1 conv (pointwise channel mix) + ReLU.
    w = jax.random.normal(kw, (C, C), dtype=jnp.float32) * 0.1

    def base_fn(v):
        return jax.nn.relu(jnp.einsum("oc,bchw->bohw", w, v))

    # 1) Identity shortcut (shortcut=None). min_pallas_bytes=0 forces the Pallas
    #    path at this tiny demo size (default: <1 MiB uses the fused XLA add).
    out = jax.block_until_ready(shortcut_block(x, base_fn, min_pallas_bytes=0))
    ref = shortcut_block_ref(x, base_fn)
    np.testing.assert_allclose(np.asarray(out), np.asarray(ref), rtol=1e-6, atol=1e-6)

    # 2) Scaling shortcut fused into the kernel via an SMEM scalar.
    out2 = jax.block_until_ready(
        shortcut_block(x, base_fn, shortcut_scale=0.5, min_pallas_bytes=0))
    ref2 = shortcut_block_ref(x, base_fn, shortcut_fn=lambda v: 0.5 * v)
    np.testing.assert_allclose(np.asarray(out2), np.asarray(ref2), rtol=1e-6, atol=1e-6)

    # 3) General callable shortcut sub-module (materialised outside the kernel).
    out3 = jax.block_until_ready(
        shortcut_block(x, base_fn, shortcut_fn=lambda v: 0.5 * v, min_pallas_bytes=0))
    np.testing.assert_allclose(np.asarray(out3), np.asarray(ref2), rtol=1e-6, atol=1e-6)

    # 4) Mixed-dtype residual (bf16 base + f32 shortcut): promotion happens in-kernel.
    def base_fn_bf16(v):
        return base_fn(v).astype(jnp.bfloat16)
    out4 = jax.block_until_ready(shortcut_block(x, base_fn_bf16, min_pallas_bytes=0))
    ref4 = shortcut_block_ref(x, base_fn_bf16)
    np.testing.assert_allclose(np.asarray(out4), np.asarray(ref4), rtol=1e-6, atol=1e-6)

    # 5) Ragged grid: rows (12) not a multiple of the tile (8) -> masked last block.
    x5 = jax.random.normal(kx, (2, 3, 16, 16), dtype=jnp.float32)
    out5 = jax.block_until_ready(
        shortcut_block(x5, lambda v: v * 2.0, min_pallas_bytes=0))
    np.testing.assert_allclose(np.asarray(out5), np.asarray(x5 * 2.0 + x5),
                               rtol=1e-6, atol=1e-6)

    # 6) Default small-tensor fallback path (plain fused XLA add).
    out6 = jax.block_until_ready(shortcut_block(x, base_fn))
    np.testing.assert_allclose(np.asarray(out6), np.asarray(ref), rtol=1e-6, atol=1e-6)

    print("KERNEL_OK")
</pallas_src>

<mosaic_0001>
module attributes {stable_mosaic.version = 11 : i64} {
  func.func @kernel(%arg0: i32, %arg1: memref<8x128xf32, #tpu.memory_space<vmem>>, %arg2: memref<8x128xf32, #tpu.memory_space<vmem>>, %arg3: memref<8x128xf32, #tpu.memory_space<vmem>>) attributes {dimension_semantics = [#tpu.dimension_semantics<parallel>], iteration_bounds = array<i64: 2>, scalar_prefetch = 0 : i64, scratch_operands = 0 : i64, tpu.core_type = #tpu.core_type<tc>, window_params = [{transform_indices = @transform_0, window_bounds = array<i64: 8, 128>}, {transform_indices = @transform_1, window_bounds = array<i64: 8, 128>}, {transform_indices = @transform_2, window_bounds = array<i64: 8, 128>}]} {
    %c0 = arith.constant 0 : index
    %c0_0 = arith.constant 0 : index
    %0 = vector.load %arg1[%c0, %c0_0] : memref<8x128xf32, #tpu.memory_space<vmem>>, vector<8x128xf32>
    %c0_1 = arith.constant 0 : index
    %c0_2 = arith.constant 0 : index
    %1 = vector.load %arg2[%c0_1, %c0_2] : memref<8x128xf32, #tpu.memory_space<vmem>>, vector<8x128xf32>
    %2 = arith.addf %0, %1 : vector<8x128xf32>
    %c0_3 = arith.constant 0 : index
    %c0_4 = arith.constant 0 : index
    %3 = vector.load %arg3[%c0_3, %c0_4] : memref<8x128xf32, #tpu.memory_space<vmem>>, vector<8x128xf32>
    tpu.vector_store %arg3[%c0_3, %c0_4], %2 {strides = array<i32>} : memref<8x128xf32, #tpu.memory_space<vmem>>, vector<8x128xf32>,
    return
  }
  func.func @transform_0(%arg0: i32) -> (i32, i32) {
    %c0_i32 = arith.constant 0 : i32
    %c0_i32_0 = arith.constant 0 : i32
    return %arg0, %c0_i32 : i32, i32
  }
  func.func @transform_1(%arg0: i32) -> (i32, i32) {
    %c0_i32 = arith.constant 0 : i32
    %c0_i32_0 = arith.constant 0 : i32
    return %arg0, %c0_i32 : i32, i32
  }
  func.func @transform_2(%arg0: i32) -> (i32, i32) {
    %c0_i32 = arith.constant 0 : i32
    %c0_i32_0 = arith.constant 0 : i32
    return %arg0, %c0_i32 : i32, i32
  }
}

</mosaic_0001>

<bundles_post_ra>
// kernel: tpu_custom_call.1
= control target key start
LH: loop header
LB: loop body
LE: loop exit
PB: predicated region body
PF: predicated region fallthrough
CT: control target
= control target key end

     0   :  { %7 = vsyncpa [#allocation3], 0  ;;  %s711_s0 = inlined_call_operand.hbm [shape: f32[16,128], index: 0, kind: input, shape index: {}]   ;;  %s712_s1 = inlined_call_operand.hbm [shape: f32[16,128], index: 1, kind: input, shape index: {}]   ;;  %s713_s2 = inlined_call_operand.hbm [shape: f32[16,128], index: 2, kind: output, shape index: {}]  }
   0x1   :  { %9 = vsyncpa [#allocation3 + $0x1], 0 }
   0x2   :  { %10 = vsyncpa [#allocation6], 0 }
   0x3   :  { %12 = vsyncpa [#allocation6 + $0x1], 0 }
   0x4   :  { %13 = vsyncpa [#allocation4], 0 }
   0x5   :  { %15 = vsyncpa [#allocation4 + $0x1], 0  ;;  %s517_s9 = smov 0   ;;  %s519_s10 = smov 0  }
   0x6   :  { %s521_s11 = smov 0   ;;  %s523_s12 = smov 0  }
   0x7 LB: > { %s538_s13 = sadd.s32 4294967295, %s497_s12   ;;  %s307_s14 = sadd.s32 4294967294, %s497_s12   ;;  %s497_s12 = sphi %s523_s12, %s732_s12   ;;  %s493_s11 = sphi %s521_s11, %s731_s11   ;;  %s489_s10 = sphi %s519_s10, %s730_s10   ;;  %s485_s9 = sphi %s517_s9, %s729_s9  }
   0x8   : > { %s542_s15 = sadd.s32 1, %s497_s12   ;;  %s28_s16 = sadd.s32 1, %s493_s11 }
   0x9   : > { %s25_s17 = ssub.s32 %s497_s12, %s542_s15  ;;  %p35_p0 = scmp.ne.s32.totalorder %s493_s11, %s489_s10 }
   0xa   : > { %p26_p1 = scmp.eq.s32.totalorder %s25_s17, 0  ;;  %p36_p2 = scmp.eq.s32.totalorder %s497_s12, 0 }
   0xb   : > { %p41_p3 = scmp.ne.s32.totalorder %s489_s10, %s485_s9  ;;  %p42_p4 = scmp.eq.s32.totalorder %s538_s13, 0 }
   0xc   : > { %s554_s18 = scalar_select %p26_p1, %s493_s11, %s28_s16  }
   0xd   : > { %p556_p5 = por %p36_p2, %p35_p0  ;;  %p560_p6 = por %p42_p4, %p41_p3 }
   0xe   : > { %p91_p7 = scmp.eq.s32.totalorder %s538_s13, 1  ;;  %p97_p8 = scmp.eq.s32.totalorder %s307_s14, 1 }
   0xf   : > { %s717_s20 = scalar_select %p560_p6, 1, 0 }
  0x10   : > { %p339_p10 = scmp.lt.s32.totalorder %s497_s12, 2  ;;  %p567_p11 = por %p91_p7, %p35_p0 }
  0x11   : > { %p571_p12 = por %p97_p8, %p41_p3  ;;  %s576_s23 = sand.u32 1, %s493_s11  }
  0x12   : > { %s718_s21 = scalar_select %p567_p11, 1, 0 }
  0x13   : > { %s719_s22 = scalar_select %p571_p12, 1, 0 }
  0x14   : > { %s311_s24 = sshll.u32 %s497_s12, 7  ;;  %s310_s25 = sshll.u32 %s576_s23, 3 }
  0x15   : > { %s585_s28 = scalar_lea.hbm %s711_s0, %s311_s24  ;;  %s121_s29 = scalar_lea.vmem [#allocation2], %s310_s25 }
  0x16   : > { %s128_s30 = sshll.u32 %s121_s29, 4  ;;  %p591_p13 = pnand %p339_p10, %p556_p5  ;;  %s595_s30 = int_to_ptr.vmem [resolvable:$true] %s128_s30 }
  0x17   : > { %s118_s4 = scalar_lea.sflag [#allocation3], %s576_s23  ;;  %s373_s5 = scalar_lea.hbm %s585_s28, 128 }
  0x18   : > { %p374_p2 = scmp.ne.s32.totalorder %s585_s28, %s373_s5  ;;  %p375_p3 = pneg %p591_p13 }
  0x19   : > { %s378_s8 = scalar_lea.hbm %s711_s0, 256  ;;  %p379_p5 = scmp.lt.s32.totalorder %s585_s28, %s711_s0 }
  0x1a   : > { %p376_p4 = pnand %p375_p3, %p374_p2  ;;  %p380_p8 = scmp.lt.s32.totalorder %s378_s8, %s373_s5 }
  0x1c   : > { %p377_p7 = pneg %p376_p4  ;;  %p381_p10 = por %p380_p8, %p379_p5 }
  0x1e   : > { %p382_p9 = pnand %p381_p10, %p377_p7 }
  0x20   : > { %385 = shalt.err (!%p382_p9)
}
  0x21   : > { %s386_s17 = scalar_lea.vmem %s595_s30, 128  ;;  %s499_s19 = smov [#allocation2]  }
  0x22   : > { %p387_p0 = scmp.ne.s32.totalorder %s595_s30, %s386_s17  ;;  %s391_s26 = sshll.u32 %s499_s19, 4  ;;  %s392_s26 = int_to_ptr.vmem [resolvable:$false] %s391_s26 }
  0x23   : > { %s393_s27 = scalar_lea.vmem %s392_s26, 256  ;;  %p394_p1 = scmp.lt.s32.totalorder %s595_s30, %s392_s26 }
  0x24   : > { %p389_p2 = pnand %p387_p0, %p375_p3  ;;  %p395_p12 = scmp.lt.s32.totalorder %s393_s27, %s386_s17 }
  0x26   : > { %p390_p4 = pneg %p389_p2  ;;  %p396_p11 = por %p395_p12, %p394_p1 }
  0x28   : > { %p397_p5 = pnand %p396_p11, %p390_p4 }
  0x2a   : > { %400 = shalt.err (!%p397_p5)
}
  0x2b   : > { %331 = dma.hbm_to_vmem [thread:$0]  (!%p591_p13), %s585_s28, 128, %s595_s30, %s118_s4  }
  0x2c   : > { %p721_p9 = scmp.lt.s32.totalorder %s497_s12, 3  ;;  %p722_p0 = scmp.ge.s32.totalorder %s497_s12, 1 }
  0x2d   : > { %s637_s7 = scalar_lea.hbm %s712_s1, %s311_s24  ;;  %s139_s8 = scalar_lea.vmem [#allocation5], %s310_s25 }
  0x2e   : > { %p628_p7 = pnand %p722_p0, %p721_p9  ;;  %s146_s14 = sshll.u32 %s139_s8, 4  ;;  %s147_s14 = int_to_ptr.vmem [resolvable:$true] %s146_s14 }
  0x2f   : > { %s136_s28 = scalar_lea.sflag [#allocation6], %s576_s23  ;;  %s401_s30 = scalar_lea.hbm %s637_s7, 128 }
  0x30   : > { %s723_s29 = scalar_select %p628_p7, 1, 0 }
  0x31   : > { %p402_p11 = scmp.ne.s32.totalorder %s637_s7, %s401_s30  ;;  %s406_s17 = scalar_lea.hbm %s712_s1, 256 }
  0x32   : > { %p407_p8 = scmp.lt.s32.totalorder %s637_s7, %s712_s1  ;;  %p408_p10 = scmp.lt.s32.totalorder %s406_s17, %s401_s30 }
  0x33   : > { %p404_p12 = pnand %p402_p11, %p375_p3 }
  0x34   : > { %p409_p2 = por %p408_p10, %p407_p8 }
  0x35   : > { %p405_p1 = pneg %p404_p12 }
  0x37   : > { %p410_p4 = pnand %p409_p2, %p405_p1 }
  0x39   : > { %413 = shalt.err (!%p410_p4)
}
  0x3a   : > { %s414_s25 = scalar_lea.vmem %s147_s14, 128  ;;  %s500_s23 = smov [#allocation5]  }
  0x3b   : > { %p415_p5 = scmp.ne.s32.totalorder %s147_s14, %s414_s25  ;;  %s419_s26 = sshll.u32 %s500_s23, 4  ;;  %s420_s26 = int_to_ptr.vmem [resolvable:$false] %s419_s26 }
  0x3c   : > { %s421_s27 = scalar_lea.vmem %s420_s26, 256  ;;  %p422_p11 = scmp.lt.s32.totalorder %s147_s14, %s420_s26 }
  0x3d   : > { %p417_p9 = pnand %p415_p5, %p375_p3  ;;  %p423_p12 = scmp.lt.s32.totalorder %s421_s27, %s414_s25 }
  0x3f   : > { %p418_p0 = pneg %p417_p9  ;;  %p424_p6 = por %p423_p12, %p422_p11 }
  0x41   : > { %p425_p7 = pnand %p424_p6, %p418_p0 }
  0x43   : > { %428 = shalt.err (!%p425_p7)
}
  0x44   : > { %334 = dma.hbm_to_vmem [thread:$0]  (!%p591_p13), %s637_s7, 128, %s147_s14, %s136_s28  }
  0x45   : > { %p724_p1 = scmp.ne.s32.totalorder %s723_s29, 0 }
  0x46   : > { %s663_s5 = sand.u32 (!%p724_p1), 1, %s489_s10   ;;  %p725_p3 = scmp.ne.s32.totalorder (!%p724_p1), %s717_s20, 0 }
  0x47   : > { %155 = sbr.rel (%p724_p1) target bundleno = 104 (0x68), region = 28  ;;  %s315_s6 = sshll.u32 (!%p724_p1), %s663_s5, 3 }
  0x48   : > { %s158_s8 = scalar_lea.sflag (!%p724_p1), [#allocation3], %s663_s5  ;;  %s161_s30 = scalar_lea.vmem (!%p724_p1), [#allocation2], %s315_s6 }
  0x4c   : > { %472 = dma.done.wait (%p725_p3), %s158_s8, 128  }
  0x4d   : > { %474 = vsyncadd (%p725_p3), %s158_s8, 4294967168  ;;  %s167_s3 = scalar_lea.sflag [#allocation6], %s663_s5  ;;  %s170_s7 = scalar_lea.vmem [#allocation5], %s315_s6 }
  0x4e   : > { %476 = dma.done.wait (%p725_p3), %s167_s3, 128  }
  0x4f   : > { %478 = vsyncadd (%p725_p3), %s167_s3, 4294967168  ;;  %s195_s29 = scalar_lea.vmem [#allocation7], %s315_s6  ;;  %s319_s28 = sshll.u32 %s538_s13, 7  ;;  %v196_v0 = vld [vmem:[%s161_s30] sm:$0xff]  ;;  %v197_v1 = vld [vmem:[%s170_s7] sm:$0xff] }
  0x50   : > { %s214_s14 = sshll.u32 %s195_s29, 4  ;;  %v198_v2 = vadd.f32 %v197_v1, %v196_v0  ;;  %s212_s17 = scalar_lea.hbm %s713_s2, %s319_s28  ;;  %s215_s14 = int_to_ptr.vmem [resolvable:$true] %s214_s14 }
  0x51   : > { %s201_s24 = scalar_lea.sflag [#allocation4], %s663_s5  ;;  %s429_s19 = scalar_lea.vmem %s215_s14, 128 }
  0x52   : > { %199 = vst [vmem:[%s195_s29] sm:$0xff] %v198_v2  ;;  %p430_p6 = scmp.ne.s32.totalorder %s215_s14, %s429_s19  ;;  %p726_p13 = scmp.ne.s32.totalorder %s718_s21, 0 }
  0x53   : > { %s501_s20 = smov [#allocation7]  }
  0x54   : > { %p431_p7 = pnand %p430_p6, %p726_p13  ;;  %s433_s25 = sshll.u32 %s501_s20, 4  ;;  %s434_s25 = int_to_ptr.vmem [resolvable:$false] %s433_s25 }
  0x55   : > { %s435_s23 = scalar_lea.vmem %s434_s25, 256  ;;  %p436_p10 = scmp.lt.s32.totalorder %s215_s14, %s434_s25 }
  0x56   : > { %p432_p8 = pneg %p431_p7  ;;  %p437_p2 = scmp.lt.s32.totalorder %s435_s23, %s429_s19 }
  0x58   : > { %p438_p4 = por %p437_p2, %p436_p10 }
  0x5a   : > { %p439_p5 = pnand %p438_p4, %p432_p8 }
  0x5c   : > { %442 = shalt.err (!%p439_p5)
}
  0x5d   : > { %s443_s13 = scalar_lea.hbm %s212_s17, 128  ;;  %s447_s5 = scalar_lea.hbm %s713_s2, 256 }
  0x5e   : > { %p444_p9 = scmp.ne.s32.totalorder %s212_s17, %s443_s13  ;;  %p448_p12 = scmp.lt.s32.totalorder %s212_s17, %s713_s2 }
  0x5f   : > { %p449_p1 = scmp.lt.s32.totalorder %s447_s5, %s443_s13 }
  0x60   : > { %p445_p0 = pnand %p444_p9, %p726_p13 }
  0x61   : > { %p450_p3 = por %p449_p1, %p448_p12 }
  0x62   : > { %p446_p11 = pneg %p445_p0 }
  0x64   : > { %p451_p6 = pnand %p450_p3, %p446_p11 }
  0x66   : > { %454 = shalt.err (!%p451_p6)
}
  0x67   : > { %326 = dma.vmem_to_hbm [thread:$0]  (%p726_p13), %s215_s14, 128, %s212_s17, %s201_s24  }
  0x68 PF: > { %s226_s30 = sand.u32 1, %s485_s9   ;;  %p727_p7 = scmp.ne.s32.totalorder %s719_s22, 0 }
  0x69   : > { %p728_p8 = scmp.ge.s32.totalorder %s497_s12, 2  ;;  %s227_s3 = scalar_lea.sflag [#allocation4], %s226_s30 }
  0x6b   : > { %p336_p10 = pnand %p728_p8, %p727_p7 }
  0x6d   : > { %p337_p2 = pneg %p336_p10 }
  0x6f   : > { %480 = dma.done.wait (%p337_p2), %s227_s3, 128  }
  0x70   : > { %482 = vsyncadd (%p337_p2), %s227_s3, 4294967168  ;;  %p18_p4 = scmp.ge.s32.totalorder %s542_s15, 4   ;;  %s729_s9 = smov %s489_s10 }
  0x71   : > { %s730_s10 = smov %s493_s11  ;;  %s731_s11 = smov %s554_s18 }
  0x72   : > { %s732_s12 = smov %s542_s15  ;;  %20 = sbr.rel (!%p18_p4) target bundleno = 7 (0x7), region = 86 }
  0x77   :  { %232 = vsyncpa [#allocation3], 1 }
  0x78   :  { %234 = vsyncpa [#allocation3 + $0x1], 1 }
  0x79   :  { %235 = vsyncpa [#allocation6], 1 }
  0x7a   :  { %237 = vsyncpa [#allocation6 + $0x1], 1 }
  0x7b   :  { %238 = vsyncpa [#allocation4], 1 }
  0x7c   :  { %240 = vsyncpa [#allocation4 + $0x1], 1 }

</bundles_post_ra>
